<compile_context>
chip_gen: v6e
topology: v6e:2x2x1
jax: 0.10.0
libtpu: 0.0.40
codegen_flags: <defaults>
</compile_context>

<pallas_src>
import functools
import math

import jax
import jax.numpy as jnp
from jax import lax
from jax.experimental import pallas as pl
from jax.experimental.pallas import tpu as pltpu


def _round_up(x, m):
    return ((x + m - 1) // m) * m


def _cdiv(a, b):
    return (a + b - 1) // b


def _label_smoothing_kernel(logp_ref, tgt_ref, acc_ref, *,
                            confidence, smoothing_value,
                            ignore_index, ignore_col,
                            n_rows, n_cols):
    i = pl.program_id(0)          # batch tile  ("parallel")
    j = pl.program_id(1)          # vocab tile  ("arbitrary", innermost reduction)
    tb, tv = logp_ref.shape

    @pl.when(j == 0)
    def _init():
        acc_ref[...] = jnp.zeros_like(acc_ref)

    logp = logp_ref[...].astype(jnp.float32)        # (tb, tv) upcast in VMEM
    tgt = tgt_ref[...]                              # (tb, 1) int32

    # Global column ids for this vocab tile (lane-axis iota, broadcast over rows).
    col = j * tv + lax.broadcasted_iota(jnp.int32, (1, tv), 1)      # (1, tv)

    is_target = col == tgt                                          # (tb, tv)

    # model_prob takes only compile-time values -> selects of constants, no jnp.log,
    # no prob>0 mask (prob is exactly 0 where masked and logp is finite on real data).
    base_prob = jnp.where(col == ignore_col, jnp.float32(0.0),
                          jnp.float32(smoothing_value))             # (1, tv)
    prob = jnp.where(is_target, jnp.float32(confidence), base_prob)  # (tb, tv)

    # Row mask: ignored-target rows contribute nothing; ragged-edge rows masked too.
    keep = tgt != ignore_index                                       # (tb, 1)
    if n_rows % tb != 0:
        row = i * tb + lax.broadcasted_iota(jnp.int32, (tb, 1), 0)
        keep = keep & (row < n_rows)

    # Keep the guards as selects (NOT multiply-by-mask): padded HBM rows/cols may hold
    # NaN/Inf garbage; jnp.where's dead branch does not propagate it.
    val = prob * logp                                                # (tb, tv)
    if n_cols % tv != 0:
        kl = jnp.where(keep & (col < n_cols), val, jnp.float32(0.0))
    else:
        kl = jnp.where(keep, val, jnp.float32(0.0))

    # Fold (tb, tv) -> (8, tv) with pure elementwise vreg adds (layout-free reshape:
    # each (8, tv) slab is a native sublane tile-row). The only cross-lane reduce is
    # the tiny jnp.sum over the (num_batch_tiles, 8, tv) partials outside the kernel.
    folded = kl.reshape(tb // 8, 8, tv).sum(axis=0)                  # (8, tv)
    acc_ref[...] += folded[None]


class LabelSmoothingLoss:
    """Pallas TPU implementation of OpenNMT's LabelSmoothingLoss forward."""

    def __init__(self, label_smoothing, tgt_vocab_size, ignore_index=-100,
                 block_b=512, block_v=2048):
        # 512x2048 f32 tiles (4 MiB, 8 MiB double-buffered) fit the default scoped VMEM
        # on v5e/v6e/v7x alike.  v6e (32 MiB scoped / 128 MiB physical) can raise to
        # 1024x2048 or 512x4096 for ~5-8% on f32 inputs; keep <= ~8 MiB per buffer on
        # v7x (64 MiB physical) — v7x is VALU-bound here anyway, so bigger tiles buy
        # little there.  v5e's best lever is feeding bf16 log-probs (no wrapper cast).
        assert 0.0 < label_smoothing <= 1.0
        assert tgt_vocab_size > 2
        assert -tgt_vocab_size <= ignore_index < tgt_vocab_size, (
            "ignore_index must index into the vocab (PyTorch one_hot[ignore_index]=0)")
        self.ignore_index = int(ignore_index)
        self.confidence = 1.0 - label_smoothing
        self.smoothing_value = label_smoothing / (tgt_vocab_size - 2)
        # 0*log(0) := 0 (matches F.kl_div's target>0 gating) when label_smoothing == 1.
        self.conf_logconf = (self.confidence * math.log(self.confidence)
                             if self.confidence > 0.0 else 0.0)
        self.sv_logsv = self.smoothing_value * math.log(self.smoothing_value)
        # PyTorch's one_hot[ignore_index] = 0 wraps negative indices.
        self.ignore_col = (self.ignore_index if self.ignore_index >= 0
                           else self.ignore_index + tgt_vocab_size)
        self.tgt_vocab_size = tgt_vocab_size
        self.block_b = int(block_b)
        self.block_v = int(block_v)

    def __call__(self, output, target):
        """
        output: (batch, n_classes) float log-probabilities (f32 or bf16; no wrapper cast)
        target: (batch,) int class indices
        returns: scalar float32 loss (reduction='sum')
        """
        B, V = output.shape
        assert V == self.tgt_vocab_size

        tb = min(self.block_b, _round_up(B, 8))
        if B <= self.block_b:
            # Guarantee >= 2 batch tiles where possible so the "parallel" axis can
            # shard across v7x's two TensorCores (no-op / harmless on v5e & v6e).
            tb = min(tb, max(8, _round_up(_cdiv(B, 2), 8)))
        tv = min(self.block_v, _round_up(V, 128))
        grid = (_cdiv(B, tb), _cdiv(V, tv))
        target2d = target.astype(jnp.int32).reshape(B, 1)

        kernel = functools.partial(
            _label_smoothing_kernel,
            confidence=self.confidence,
            smoothing_value=self.smoothing_value,
            ignore_index=self.ignore_index,
            ignore_col=self.ignore_col,
            n_rows=B,
            n_cols=V,
        )

        itemsize = jnp.dtype(output.dtype).itemsize
        cost = pl.CostEstimate(
            flops=5 * B * V,
            transcendentals=0,
            bytes_accessed=B * V * itemsize + B * 4 + grid[0] * 8 * tv * 4,
        )

        partials = pl.pallas_call(
            kernel,
            out_shape=jax.ShapeDtypeStruct((grid[0], 8, tv), jnp.float32),
            grid_spec=pltpu.PrefetchScalarGridSpec(
                num_scalar_prefetch=0,
                grid=grid,
                in_specs=[
                    pl.BlockSpec((tb, tv), lambda i, j: (i, j)),   # log-probs tile
                    pl.BlockSpec((tb, 1), lambda i, j: (i, 0)),    # targets per batch tile
                ],
                out_specs=pl.BlockSpec((1, 8, tv), lambda i, j: (i, 0, 0)),
            ),
            compiler_params=pltpu.CompilerParams(
                dimension_semantics=("parallel", "arbitrary")),
            cost_estimate=cost,
        )(output, target2d)

        # Analytic  sum(prob * log(prob))  over kept rows (hoisted out of the kernel):
        #   each kept row has `confidence` at its target column, 0 at ignore_col and
        #   smoothing_value on the remaining V-2 columns.
        kept = target != self.ignore_index
        n_kept = jnp.sum(kept).astype(jnp.float32)
        plogp = n_kept * jnp.float32(self.conf_logconf + (V - 2) * self.sv_logsv)
        if self.ignore_index < 0:
            # A negative ignore_index wraps; a kept target may coincide with ignore_col,
            # in which case that row has V-1 (not V-2) smoothing-valued columns.
            n_wrap = jnp.sum(kept & (target == self.ignore_col)).astype(jnp.float32)
            plogp = plogp + n_wrap * jnp.float32(self.sv_logsv)

        # loss = sum(prob*log(prob)) - sum(prob*logp); the kernel accumulated the latter.
        return plogp - jnp.sum(partials)


if __name__ == "__main__":
    key = jax.random.PRNGKey(0)
    B, V = 64, 512
    label_smoothing = 0.1
    ignore_index = 1  # padding token id (OpenNMT passes the pad index explicitly)

    k_logits, k_tgt = jax.random.split(key)
    logits = jax.random.normal(k_logits, (B, V), dtype=jnp.float32)
    output = jax.nn.log_softmax(logits, axis=-1)            # model log-probs
    target = jax.random.randint(k_tgt, (B,), 0, V, dtype=jnp.int32)
    # make a couple of rows "ignored" (padding) positions
    target = target.at[3].set(ignore_index)
    target = target.at[17].set(ignore_index)

    # small blocks -> real 4x4 grid to exercise the pipelined/accumulator path
    loss_fn = LabelSmoothingLoss(label_smoothing, V, ignore_index=ignore_index,
                                 block_b=16, block_v=128)
    loss = loss_fn(output, target)
    jax.block_until_ready(loss)

    # pure-JAX reference for sanity
    smoothing_value = label_smoothing / (V - 2)
    one_hot = jnp.full((V,), smoothing_value, jnp.float32).at[ignore_index].set(0.0)
    model_prob = jnp.broadcast_to(one_hot[None, :], (B, V))
    model_prob = model_prob.at[jnp.arange(B), target].set(1.0 - label_smoothing)
    model_prob = jnp.where((target == ignore_index)[:, None], 0.0, model_prob)
    ref = jnp.sum(jnp.where(model_prob > 0,
                            model_prob * (jnp.log(model_prob) - output), 0.0))
    assert jnp.allclose(loss, ref, rtol=1e-4, atol=1e-4), (loss, ref)

    # also exercise the default-blocks path (single vocab tile, >=2 batch tiles)
    loss2 = LabelSmoothingLoss(label_smoothing, V, ignore_index=ignore_index)(output, target)
    jax.block_until_ready(loss2)
    assert jnp.allclose(loss2, ref, rtol=1e-4, atol=1e-4), (loss2, ref)

    print("KERNEL_OK")
</pallas_src>

<mosaic_0001>
module attributes {stable_mosaic.version = 11 : i64} {
  func.func @_label_smoothing_kernel(%arg0: i32, %arg1: i32, %arg2: memref<16x128xf32, #tpu.memory_space<vmem>>, %arg3: memref<16x1xi32, #tpu.memory_space<vmem>>, %arg4: memref<1x8x128xf32, #tpu.memory_space<vmem>>) attributes {dimension_semantics = [#tpu.dimension_semantics<parallel>, #tpu.dimension_semantics<arbitrary>], iteration_bounds = array<i64: 4, 4>, scalar_prefetch = 0 : i64, scratch_operands = 0 : i64, tpu.core_type = #tpu.core_type<tc>, window_params = [{transform_indices = @transform_0, window_bounds = array<i64: 16, 128>}, {transform_indices = @transform_1, window_bounds = array<i64: 16, 1>}, {transform_indices = @transform_2, window_bounds = array<i64: 1, 8, 128>}]} {
    %c0_i32 = arith.constant 0 : i32
    %0 = arith.cmpi eq, %arg1, %c0_i32 : i32
    %1 = arith.extui %0 : i1 to i32
    %c0_i32_0 = arith.constant 0 : i32
    %2 = arith.cmpi ne, %1, %c0_i32_0 : i32
    scf.if %2 {
      %cst_15 = arith.constant 0.000000e+00 : f32
      %34 = vector.broadcast %cst_15 : f32 to vector<1x8x128xf32>
      %c0_16 = arith.constant 0 : index
      %c0_17 = arith.constant 0 : index
      %c0_18 = arith.constant 0 : index
      %35 = vector.load %arg4[%c0_16, %c0_17, %c0_18] : memref<1x8x128xf32, #tpu.memory_space<vmem>>, vector<1x8x128xf32>
      tpu.vector_store %arg4[%c0_16, %c0_17, %c0_18], %34 {strides = array<i32>} : memref<1x8x128xf32, #tpu.memory_space<vmem>>, vector<1x8x128xf32>,
    } else {
    }
    %c0 = arith.constant 0 : index
    %c0_1 = arith.constant 0 : index
    %3 = vector.load %arg2[%c0, %c0_1] : memref<16x128xf32, #tpu.memory_space<vmem>>, vector<16x128xf32>
    %c0_2 = arith.constant 0 : index
    %c0_3 = arith.constant 0 : index
    %4 = vector.load %arg3[%c0_2, %c0_3] : memref<16x1xi32, #tpu.memory_space<vmem>>, vector<16x1xi32>
    %c128_i32 = arith.constant 128 : i32
    %5 = arith.muli %arg1, %c128_i32 : i32
    %6 = tpu.iota {dimensions = array<i32: 1>} : vector<1x128xi32>
    %7 = vector.broadcast %5 : i32 to vector<1x128xi32>
    %8 = arith.addi %7, %6 : vector<1x128xi32>
    %9 = vector.broadcast %8 : vector<1x128xi32> to vector<16x128xi32>
    %10 = vector.broadcast %4 : vector<16x1xi32> to vector<16x128xi32>
    %11 = arith.cmpi eq, %9, %10 : vector<16x128xi32>
    %c1_i32 = arith.constant 1 : i32
    %12 = vector.broadcast %c1_i32 : i32 to vector<1x128xi32>
    %13 = arith.cmpi eq, %8, %12 : vector<1x128xi32>
    %cst = arith.constant 0.000000e+00 : f32
    %cst_4 = arith.constant 1.96078428E-4 : f32
    %14 = vector.broadcast %cst : f32 to vector<1x128xf32>
    %15 = vector.broadcast %cst_4 : f32 to vector<1x128xf32>
    %16 = arith.select %13, %14, %15 : vector<1x128xi1>, vector<1x128xf32>
    %cst_5 = arith.constant 0.899999976 : f32
    %17 = vector.broadcast %cst_5 : f32 to vector<16x128xf32>
    %18 = vector.shape_cast %16 : vector<1x128xf32> to vector<1x128xf32>
    %19 = vector.broadcast %18 : vector<1x128xf32> to vector<16x128xf32>
    %20 = arith.select %11, %17, %19 : vector<16x128xi1>, vector<16x128xf32>
    %c1_i32_6 = arith.constant 1 : i32
    %21 = vector.broadcast %c1_i32_6 : i32 to vector<16x1xi32>
    %22 = arith.cmpi ne, %4, %21 : vector<16x1xi32>
    %23 = arith.mulf %20, %3 : vector<16x128xf32>
    %cst_7 = arith.constant 0.000000e+00 : f32
    %24 = vector.shape_cast %22 : vector<16x1xi1> to vector<16x1xi1>
    %25 = vector.broadcast %24 : vector<16x1xi1> to vector<16x128xi1>
    %26 = vector.broadcast %cst_7 : f32 to vector<16x128xf32>
    %27 = arith.select %25, %23, %26 : vector<16x128xi1>, vector<16x128xf32>
    %28 = vector.shape_cast %27 : vector<16x128xf32> to vector<2x8x128xf32>
    %cst_8 = arith.constant dense<0.000000e+00> : vector<8x128xf32>
    %29 = vector.multi_reduction <add>, %28, %cst_8 [0] : vector<2x8x128xf32> to vector<8x128xf32>
    %c0_9 = arith.constant 0 : index
    %c0_10 = arith.constant 0 : index
    %c0_11 = arith.constant 0 : index
    %30 = vector.load %arg4[%c0_9, %c0_10, %c0_11] : memref<1x8x128xf32, #tpu.memory_space<vmem>>, vector<1x8x128xf32>
    %31 = vector.shape_cast %29 : vector<8x128xf32> to vector<1x8x128xf32>
    %32 = arith.addf %30, %31 : vector<1x8x128xf32>
    %c0_12 = arith.constant 0 : index
    %c0_13 = arith.constant 0 : index
    %c0_14 = arith.constant 0 : index
    %33 = vector.load %arg4[%c0_12, %c0_13, %c0_14] : memref<1x8x128xf32, #tpu.memory_space<vmem>>, vector<1x8x128xf32>
    tpu.vector_store %arg4[%c0_12, %c0_13, %c0_14], %32 {strides = array<i32>} : memref<1x8x128xf32, #tpu.memory_space<vmem>>, vector<1x8x128xf32>,
    return
  }
  func.func @transform_0(%arg0: i32, %arg1: i32) -> (i32, i32) {
    %c0_i32 = arith.constant 0 : i32
    return %arg0, %arg1 : i32, i32
  }
  func.func @transform_1(%arg0: i32, %arg1: i32) -> (i32, i32) {
    %c0_i32 = arith.constant 0 : i32
    %c0_i32_0 = arith.constant 0 : i32
    return %arg0, %c0_i32 : i32, i32
  }
  func.func @transform_2(%arg0: i32, %arg1: i32) -> (i32, i32, i32) {
    %c0_i32 = arith.constant 0 : i32
    %c0_i32_0 = arith.constant 0 : i32
    %c0_i32_1 = arith.constant 0 : i32
    return %arg0, %c0_i32, %c0_i32_0 : i32, i32, i32
  }
}

</mosaic_0001>

<bundles_post_ra>
// kernel: tpu_custom_call.1
= control target key start
LH: loop header
LB: loop body
LE: loop exit
PB: predicated region body
PF: predicated region fallthrough
CT: control target
= control target key end

     0   :  { %7 = vsyncpa [#allocation3], 0  ;;  %s858_s0 = inlined_call_operand.hbm [shape: f32[64,512], index: 0, kind: input, shape index: {}]   ;;  %s859_s1 = inlined_call_operand.vmem [shape: s32[64,1], index: 1, kind: input, shape index: {}]   ;;  %s860_s2 = inlined_call_operand.hbm [shape: f32[4,8,128], index: 2, kind: output, shape index: {}]  }
   0x1   :  { %9 = vsyncpa [#allocation3 + $0x1], 0 }
   0x2   :  { %10 = vsyncpa [#allocation4], 0 }
   0x3   :  { %12 = vsyncpa [#allocation4 + $0x1], 0  ;;  %s659_s9 = smov 0   ;;  %s661_s10 = smov 0  }
   0x4   :  { %s663_s11 = smov 0   ;;  %s665_s12 = smov 0  }
   0x5   :  { %s667_s13 = smov 0   ;;  %s669_s14 = smov 0  }
   0x6   :  { %s671_s15 = smov 0   ;;  %s673_s16 = smov 0  }
   0x7   :  { %s675_s17 = smov 0   ;;  %s677_s18 = smov 0  }
   0x8   :  { %s679_s19 = smov 0  }
   0x9 LB: > { %s356_s20 = sadd.s32 4294967295, %s634_s19   ;;  %s357_s21 = sadd.s32 4294967294, %s634_s19   ;;  %s634_s19 = sphi %s679_s19, %s18_s19   ;;  %s630_s18 = sphi %s677_s18, %s883_s18   ;;  %s626_s17 = sphi %s675_s17, %s882_s17   ;;  %s622_s16 = sphi %s673_s16, %s881_s16   ;;  %s618_s15 = sphi %s671_s15, %s880_s15   ;;  %s614_s14 = sphi %s669_s14, %s879_s14   ;;  %s610_s13 = sphi %s667_s13, %s878_s13   ;;  %s606_s12 = sphi %s665_s12, %s877_s12   ;;  %s602_s11 = sphi %s663_s11, %s876_s11   ;;  %s598_s10 = sphi %s661_s10, %s875_s10   ;;  %s594_s9 = sphi %s659_s9, %s874_s9  }
   0xa   : > { %s27_s22 = sadd.s32 1, %s626_s17  ;;  %s30_s23 = sadd.s32 1, %s630_s18 }
   0xb   : > { %p28_p0 = scmp.ge.s32.totalorder %s27_s22, 4  ;;  %s39_s24 = sadd.s32 1, %s614_s14 }
   0xc   : > { %p46_p1 = scmp.ne.s32.totalorder %s614_s14, %s610_s13  ;;  %p47_p2 = scmp.eq.s32.totalorder %s634_s19, 0 }
   0xd   : > { %s885_s22 = smov (%p28_p0, %s27_s22), 0  ;;  %s887_s23 = smov (!%p28_p0, %s30_s23), %s630_s18 }
   0xe   : > { %863 = sst [smem:[#allocation8_spill]] %s885_s22  ;;  %s35_s25 = ssub.s32 %s626_s17, %s885_s22 }
   0xf   : > { %p725_p3 = por %p47_p2, %p46_p1  ;;  %p32_p4 = scmp.ge.s32.totalorder %s887_s23, 4 }
  0x10   : > { %p52_p5 = scmp.ne.s32.totalorder %s610_s13, %s606_s12  ;;  %p53_p6 = scmp.eq.s32.totalorder %s356_s20, 0 }
  0x11   : > { %s91_s27 = sadd.s32 1, %s602_s11  ;;  %s889_s23 = smov (%p32_p4, %s887_s23), 0 }
  0x12   : > { %865 = sst [smem:[#allocation9_spill]] %s889_s23  ;;  %p733_p7 = por %p53_p6, %p52_p5 }
  0x13   : > { %p101_p8 = scmp.ne.s32.totalorder %s602_s11, %s598_s10  ;;  %s34_s29 = ssub.s32 %s630_s18, %s889_s23 }
  0x14   : > { %p102_p9 = scmp.eq.s32.totalorder %s356_s20, 15  ;;  %s36_s30 = sor.u32 %s35_s25, %s34_s29 }
  0x15   : > { %p89_p10 = scmp.eq.s32.totalorder %s34_s29, 0  ;;  %p37_p11 = scmp.eq.s32.totalorder %s36_s30, 0 }
  0x16   : > { %p741_p12 = por %p102_p9, %p101_p8  ;;  %p107_p13 = scmp.ne.s32.totalorder %s598_s10, %s594_s9 }
  0x17   : > { %s746_s4 = scalar_select %p89_p10, %s602_s11, %s91_s27  }
  0x18   : > { %s749_s5 = scalar_select %p37_p11, %s614_s14, %s39_s24  }
  0x19   : > { %p108_p0 = scmp.eq.s32.totalorder %s357_s21, 15  ;;  %p388_p1 = scmp.lt.s32.totalorder %s634_s19, 16 }
  0x1a   : > { %868 = sst [smem:[#allocation10_spill]] %s749_s5  ;;  %s128_s7 = sand.u32 1, %s614_s14  }
  0x1b   : > { %p754_p2 = por %p108_p0, %p107_p13  ;;  %s360_s8 = sshll.u32 %s128_s7, 4 }
  0x1c   : > { %s375_s12 = sshll.u32 %s630_s18, 3  ;;  %s132_s25 = scalar_lea.vmem [#allocation2], %s360_s8 }
  0x1d   : > { %s138_s20 = sadd.s32 %s626_s17, %s375_s12  ;;  %s141_s29 = sshll.u32 %s132_s25, 4  ;;  %s142_s29 = int_to_ptr.vmem [resolvable:$true] %s141_s29 }
  0x1e   : > { %s363_s30 = sshll.u32 %s138_s20, 7  ;;  %p766_p4 = pnand %p388_p1, %p725_p3 }
  0x1f   : > { %s140_s24 = scalar_lea.hbm %s858_s0, %s363_s30  ;;  %s129_s22 = scalar_lea.sflag [#allocation3], %s128_s7 }
  0x20   : > { %p488_p5 = pneg %p766_p4  ;;  %s499_s5 = scalar_lea.vmem %s142_s29, 256 }
  0x21   : > { %p500_p6 = scmp.ne.s32.totalorder %s142_s29, %s499_s5  ;;  %s636_s8 = smov [#allocation2]  }
  0x22   : > { %s504_s12 = sshll.u32 %s636_s8, 4  ;;  %s505_s12 = int_to_ptr.vmem [resolvable:$false] %s504_s12 }
  0x23   : > { %p502_p8 = pnand %p500_p6, %p488_p5  ;;  %s506_s20 = scalar_lea.vmem %s505_s12, 512 }
  0x24   : > { %p507_p10 = scmp.lt.s32.totalorder %s142_s29, %s505_s12  ;;  %p508_p11 = scmp.lt.s32.totalorder %s506_s20, %s499_s5 }
  0x25   : > { %p503_p9 = pneg %p502_p8 }
  0x26   : > { %p509_p13 = por %p508_p11, %p507_p10 }
  0x28   : > { %p510_p0 = pnand %p509_p13, %p503_p9 }
  0x2a   : > { %513 = shalt.err (!%p510_p0)
}
  0x2b   : > { %s637_s23 = smov 512   ;;  %s638_s26 = smov 128  }
  0x2c   : > { %s639_s7 = smov 8   ;;  %p364_p3 = scmp.ge.s32.totalorder %s634_s19, 1 }
  0x2d   : > { %383 = dma.hbm_to_vmem [thread:$0]  (!%p766_p4), %s140_s24, 256, %s142_s29, %s129_s22, %s637_s23, %s638_s26, %s639_s7  }
  0x2e   : > { %p158_p1 = scmp.lt.s32.totalorder %s634_s19, 17 }
  0x30   : > { %p159_p5 = pnand %p364_p3, %p158_p1 }
  0x31   : > { %s164_s25 = sand.u32 (!%p159_p5), 1, %s610_s13  }
  0x32   : > { %162 = sbr.rel (%p159_p5) target bundleno = 219 (0xdb), region = 28  ;;  %s777_s30 = sshll.u32 (!%p159_p5), %s164_s25, 4 }
  0x33   : > { %s165_s5 = scalar_lea.sflag (!%p159_p5), [#allocation3], %s164_s25  ;;  %s168_s27 = scalar_lea.vmem (!%p159_p5), [#allocation2], %s777_s30 }
  0x37   : > { %585 = dma.done.wait (%p733_p7), %s165_s5, 256  }
  0x38   : > { %587 = vsyncadd (%p733_p7), %s165_s5, 4294967040  ;;  %s191_s22 = sand.u32 1, %s598_s10   ;;  %s367_s29 = sshll.u32 %s622_s16, 1 }
  0x39   : > { %s366_s24 = sshll.u32 %s191_s22, 3  ;;  %p196_p4 = scmp.lt.s32.totalorder %s367_s29, 7 }
  0x3a   : > { %s791_s23 = scalar_lea.vmem [#allocation5], %s366_s24  ;;  %p369_p6 = scmp.ne.s32.totalorder %s618_s15, 0 }
  0x3b   : > { %s891_s29 = smov (!%p196_p4, %s367_s29), 7 }
  0x3c   : > { %s368_s21 = sshll.u32 %s891_s29, 3  ;;  %204 = sbr.rel (%p369_p6) target bundleno = 67 (0x43), region = 36 }
  0x3d   : > { %s199_s20 = scalar_lea.vmem %s859_s1, %s368_s21 }
  0x41   : > { %v640_v0 = vmov 0.0  }
  0x42   : > { %205 = vst [vmem:[%s791_s23] sm:$0xff] %v640_v0 }
  0x43 PF: > { %v208_v1 = vld [vmem:[%s199_s20] sm:$0xff]  ;;  %v209_v2 = vld [vmem:[%s199_s20 + $0x8] sm:$0xff]  ;;  %v641_v3 = vmov 0   ;;  %v211_v6 = vlaneseq  ;;  %s370_s28 = sshll.u32 %s618_s15, 7  ;;  %v642_v10 = vmov 0.00019607843  }
  0x44   : > { %484 = vset.pattern.permute.xlu0 %v641_v3  ;;  %485 = vset.pattern.permute.xlu1 %v641_v3  ;;  %vm227_vm0 = vcmp.ne.s32.totalorder %v208_v1, 1  ;;  %vm228_vm1 = vcmp.ne.s32.totalorder %v209_v2, 1  ;;  %v213_v8 = vstv %s370_s28  ;;  %v206_v14 = vld [vmem:[%s168_s27] sm:$0xff]  ;;  %v207_v17 = vld [vmem:[%s168_s27 + $0x8] sm:$0xff]  ;;  %s372_s15 = sshll.u32 %s622_s16, 7  ;;  %s261_s26 = sshll.u32 %s791_s23, 4  ;;  %s262_s26 = int_to_ptr.vmem [resolvable:$true] %s261_s26 }
  0x45   : > { %216 = vperm.xlu0 %484, %v208_v1   ;;  %v231_v4 = vsel %vm227_vm0, 1, %v641_v3  ;;  %v232_v5 = vsel %vm228_vm1, 1, %v641_v3  ;;  %v212_v7 = vand.u32 127, %v211_v6  ;;  %s259_s30 = scalar_lea.hbm %s860_s2, %s372_s15  ;;  %s248_s5 = scalar_lea.sflag [#allocation4], %s191_s22 }
  0x46   : > { %234 = vperm.xlu1 %485, %v231_v4   ;;  %s514_s27 = scalar_lea.vmem %s262_s26, 128  ;;  %s643_s29 = smov [#allocation5]  }
  0x47   : > { %v214_v9 = vadd.s32 %v213_v8, %v212_v7  ;;  %p515_p7 = scmp.ne.s32.totalorder %s262_s26, %s514_s27  ;;  %s518_s24 = sshll.u32 %s643_s29, 4  ;;  %s519_s24 = int_to_ptr.vmem [resolvable:$false] %s518_s24 }
  0x48   : > { %s520_s16 = scalar_lea.vmem %s519_s24, 256  ;;  %p521_p10 = scmp.lt.s32.totalorder %s262_s26, %s519_s24 }
  0x49   : > { %219 = vperm.xlu0 %484, %v209_v2   ;;  %vm223_vm2 = vcmp.eq.s32.totalorder %v214_v9, 1  ;;  %v244_v23 = vld [vmem:[%s791_s23] sm:$0xff]  ;;  %p516_p8 = pnand %p515_p7, %p741_p12  ;;  %p522_p11 = scmp.lt.s32.totalorder %s520_s16, %s514_s27 }
  0x4a   : > { %237 = vperm.xlu1 %485, %v232_v5   ;;  %v224_v11 = vsel %vm223_vm2, 0.0, %v642_v10 }
  0x4b   : > { %p517_p9 = pneg %p516_p8  ;;  %p523_p13 = por %p522_p11, %p521_p10 }
  0x4d   : > { %p524_p0 = pnand %p523_p13, %p517_p9 }
  0xc0   : > { %v217_v12 = vpop.permute.xlu0 %216 }
  0xc1   : > { %vm221_vm3 = vcmp.eq.s32.totalorder %v214_v9, %v217_v12  ;;  %v235_v13 = vpop.permute.xlu1 %234 }
  0xc2   : > { %v225_v15 = vsel %vm221_vm3, 0.9, %v224_v11  ;;  %vm239_vm5 = vcmp.eq.s32.totalorder %v235_v13, 1 }
  0xc3   : > { %v229_v18 = vmul.f32 %v225_v15, %v206_v14 }
  0xc4   : > { %v220_v16 = vpop.permute.xlu0 %219 }
  0xc5   : > { %vm222_vm4 = vcmp.eq.s32.totalorder %v214_v9, %v220_v16  ;;  %v238_v19 = vpop.permute.xlu1 %237  ;;  %v241_v22 = vsel %vm239_vm5, %v229_v18, 0.0 }
  0xc6   : > { %v226_v20 = vsel %vm222_vm4, 0.9, %v224_v11  ;;  %vm240_vm6 = vcmp.eq.s32.totalorder %v238_v19, 1 }
  0xc7   : > { %v230_v21 = vmul.f32 %v226_v20, %v207_v17 }
  0xc9   : > { %v242_v24 = vsel %vm240_vm6, %v230_v21, 0.0 }
  0xca   : > { %v243_v25 = vadd.f32 %v242_v24, %v241_v22 }
  0xcc   : > { %v245_v26 = vadd.f32 %v244_v23, %v243_v25 }
  0xce   : > { %246 = vst [vmem:[%s791_s23] sm:$0xff] %v245_v26 }
  0xcf   : > { %527 = shalt.err (!%p524_p0)
}
  0xd0   : > { %s528_s21 = scalar_lea.hbm %s259_s30, 128  ;;  %s532_s12 = scalar_lea.hbm %s860_s2, 512 }
  0xd1   : > { %p529_p3 = scmp.ne.s32.totalorder %s259_s30, %s528_s21  ;;  %p533_p4 = scmp.lt.s32.totalorder %s259_s30, %s860_s2 }
  0xd2   : > { %p534_p6 = scmp.lt.s32.totalorder %s532_s12, %s528_s21 }
  0xd3   : > { %p530_p1 = pnand %p529_p3, %p741_p12 }
  0xd4   : > { %p535_p7 = por %p534_p6, %p533_p4 }
  0xd5   : > { %p531_p5 = pneg %p530_p1 }
  0xd7   : > { %p536_p8 = pnand %p535_p7, %p531_p5 }
  0xd9   : > { %539 = shalt.err (!%p536_p8)
}
  0xda   : > { %378 = dma.vmem_to_hbm [thread:$0]  (%p741_p12), %s262_s26, 128, %s259_s30, %s248_s5  }
  0xdb PF: > { %p389_p9 = scmp.ge.s32.totalorder %s634_s19, 2  ;;  %s273_s28 = sand.u32 1, %s594_s9  }
  0xdc   : > { %s274_s15 = scalar_lea.sflag [#allocation4], %s273_s28 }
  0xdd   : > { %p385_p10 = pnand %p389_p9, %p754_p2 }
  0xdf   : > { %p386_p11 = pneg %p385_p10 }
  0xe1   : > { %589 = dma.done.wait (%p386_p11), %s274_s15, 128  }
  0xe2   : > { %591 = vsyncadd (%p386_p11), %s274_s15, 4294967168  ;;  %s18_s19 = sadd.s32 1, %s634_s19   ;;  %s871_s3 = sld [smem:[#allocation10_spill]] }
  0xe3   : > { %p15_p13 = scmp.ge.s32.totalorder %s18_s19, 18   ;;  %s872_s26 = sld [smem:[#allocation8_spill]] }
  0xe4   : > { %s873_s7 = sld [smem:[#allocation9_spill]]  ;;  %s874_s9 = smov %s598_s10 }
  0xe5   : > { %s875_s10 = smov %s602_s11  ;;  %s876_s11 = smov %s746_s4 }
  0xe6   : > { %s877_s12 = smov %s610_s13  ;;  %s878_s13 = smov %s614_s14 }
  0xe7   : > { %s880_s15 = smov %s626_s17  ;;  %s881_s16 = smov %s630_s18 }
  0xe8   : > { %s879_s14 = smov %s871_s3  ;;  %17 = sbr.rel (!%p15_p13) target bundleno = 9 (0x9), region = 80 }
  0xe9   : > { %s882_s17 = smov %s872_s26 }
  0xea   : > { %s883_s18 = smov %s873_s7 }
  0xed   :  { %279 = vsyncpa [#allocation3], 1 }
  0xee   :  { %281 = vsyncpa [#allocation3 + $0x1], 1 }
  0xef   :  { %282 = vsyncpa [#allocation4], 1 }
  0xf0   :  { %284 = vsyncpa [#allocation4 + $0x1], 1 }

</bundles_post_ra>
